<compile_context>
chip_gen: v6e
topology: v6e:2x2x1
jax: 0.10.0
libtpu: 0.0.40
codegen_flags: <defaults>
</compile_context>

<pallas_src>
import jax
import jax.numpy as jnp
from jax.experimental import pallas as pl
from jax.experimental.pallas import tpu as pltpu


def _pose2d_kernel(x_ref, w_ref, b_ref, g_ref, o_ref, m_sc, s_sc, acc_sc):
    # x_ref:  (1, C, T)   feature-map tile for one batch element (T = HW tile)
    # w_ref:  (J, C)      1x1 conv weight
    # b_ref:  (J, 1)      conv bias (f32)
    # g_ref:  (T, 2)      coordinate grid tile: [:, 0] = x grid, [:, 1] = y grid
    # o_ref:  (1, J, 2)   output pose coordinates
    # m_sc:   (J, 1) f32  running max          (VMEM scratch)
    # s_sc:   (J, 1) f32  running sum of exp   (VMEM scratch)
    # acc_sc: (J, 2) f32  running exp @ grid   (VMEM scratch)
    t = pl.program_id(1)

    @pl.when(t == 0)
    def _init():
        m_sc[...] = jnp.full_like(m_sc, -jnp.inf)
        s_sc[...] = jnp.zeros_like(s_sc)
        acc_sc[...] = jnp.zeros_like(acc_sc)

    bias = b_ref[...]                                   # (J, 1) f32
    C = x_ref.shape[1]
    if C <= 16:
        # Small-C path: unrolled VPU channel sum (avoids padding a 256-deep
        # MXU contraction for e.g. C=4).  Accumulate in f32.
        x = x_ref[0].astype(jnp.float32)                # (C, T)
        w = w_ref[...].astype(jnp.float32)              # (J, C)
        heat = bias + w[:, 0:1] * x[0:1, :]             # (J, T)
        for c in range(1, C):
            heat = heat + w[:, c:c + 1] * x[c:c + 1, :]
    else:
        # Large-C path: 1x1 conv == channel matmul on the MXU, f32 accumulate.
        heat = jnp.dot(w_ref[...], x_ref[0],
                       preferred_element_type=jnp.float32) + bias   # (J, T)

    # Online (flash-style) softmax statistics over the tiled spatial axis.
    m_prev = m_sc[...]                                  # (J, 1)
    m_new = jnp.maximum(m_prev, jnp.max(heat, axis=-1, keepdims=True))
    alpha = jnp.exp(m_prev - m_new)                     # (J, 1) rescale factor
    p = jnp.exp(heat - m_new)                           # (J, T) un-normalized

    s_sc[...] = alpha * s_sc[...] + jnp.sum(p, axis=-1, keepdims=True)
    # Soft-argmax numerator on the (otherwise idle) MXU: (J, T) @ (T, 2).
    acc_sc[...] = alpha * acc_sc[...] + jnp.dot(
        p, g_ref[...], preferred_element_type=jnp.float32)          # (J, 2)
    m_sc[...] = m_new

    @pl.when(t == pl.num_programs(1) - 1)
    def _finalize():
        # Normalize only the tiny (J, 2) result (softmax divide fused here).
        inv_s = pl.reciprocal(s_sc[...], approx=False)               # (J, 1)
        o_ref[0] = (acc_sc[...] * inv_s).astype(o_ref.dtype)


def _pick_hw_tile(hw, max_tile=2048):
    """Largest multiple-of-128 divisor of hw that is <= max_tile, else hw."""
    if hw <= max_tile or hw % 128 != 0:
        return hw
    tile = (max_tile // 128) * 128
    while tile > 128 and hw % tile != 0:
        tile -= 128
    return tile if hw % tile == 0 else hw


def pose2d_head(x_nchw, conv_w, conv_b, *, hw_tile=None,
                compute_dtype=jnp.bfloat16,
                vmem_limit_bytes=32 * 1024 * 1024):
    """Forward pass of Pose2DHead (1x1 conv + SoftArgMax2d).

    Args:
      x_nchw: (B, C, H, W) float input features.
      conv_w: (J, C) (or (J, C, 1, 1)) 1x1 conv weight.
      conv_b: (J,) conv bias.
      hw_tile: spatial (H*W) tile size; multiple of 128 dividing H*W, or None
        to auto-pick.
      compute_dtype: storage dtype for x / w streamed from HBM (bf16 halves
        HBM traffic; all accumulation is f32 in-kernel).
    Returns:
      (B, J, 2) float32 pose coordinates in [0, 1].
    """
    B, C, H, W = x_nchw.shape
    J = conv_b.shape[0]
    HW = H * W

    if hw_tile is None:
        hw_tile = _pick_hw_tile(HW)
    assert HW % hw_tile == 0 and (hw_tile == HW or hw_tile % 128 == 0), (
        f"hw_tile={hw_tile} must divide HW={HW} and be a multiple of 128 "
        f"(or equal HW)")
    n_tiles = HW // hw_tile

    x_flat = x_nchw.reshape(B, C, HW).astype(compute_dtype)
    w = conv_w.reshape(J, C).astype(compute_dtype)
    bias = conv_b.reshape(J, 1).astype(jnp.float32)

    # Coordinate grid, flattened like the heat map: g[h*W + w] = (x_sp[w], y_sp[h]).
    x_sp = jnp.linspace(0.0, 1.0, W, dtype=jnp.float32)
    y_sp = jnp.linspace(0.0, 1.0, H, dtype=jnp.float32)
    g = jnp.stack([jnp.tile(x_sp, (H,)), jnp.repeat(y_sp, W)], axis=1)  # (HW, 2)

    out = pl.pallas_call(
        _pose2d_kernel,
        out_shape=jax.ShapeDtypeStruct((B, J, 2), jnp.float32),
        grid_spec=pltpu.PrefetchScalarGridSpec(
            num_scalar_prefetch=0,
            grid=(B, n_tiles),
            in_specs=[
                pl.BlockSpec((1, C, hw_tile), lambda b, t: (b, 0, t)),
                pl.BlockSpec((J, C), lambda b, t: (0, 0)),
                pl.BlockSpec((J, 1), lambda b, t: (0, 0)),
                pl.BlockSpec((hw_tile, 2), lambda b, t: (t, 0)),
            ],
            out_specs=pl.BlockSpec((1, J, 2), lambda b, t: (b, 0, 0)),
            scratch_shapes=[
                pltpu.VMEM((J, 1), jnp.float32),   # running max
                pltpu.VMEM((J, 1), jnp.float32),   # running sum
                pltpu.VMEM((J, 2), jnp.float32),   # running coord accumulator
            ],
        ),
        compiler_params=pltpu.CompilerParams(
            dimension_semantics=("parallel", "arbitrary"),
            vmem_limit_bytes=vmem_limit_bytes,
        ),
    )(x_flat, w, bias, g)
    return out


def pose2d_head_ref(x_nchw, conv_w, conv_b):
    """Pure-JAX reference mirroring the PyTorch module (f32 throughout)."""
    B, C, H, W = x_nchw.shape
    heat = jnp.einsum("jc,bchw->bjhw", conv_w, x_nchw) + conv_b[None, :, None, None]
    flat = heat.reshape(B, conv_b.shape[0], H * W)
    sm = jax.nn.softmax(flat, axis=2).reshape(B, conv_b.shape[0], H, W)
    x_sp = jnp.linspace(0.0, 1.0, W, dtype=jnp.float32)
    y_sp = jnp.linspace(0.0, 1.0, H, dtype=jnp.float32)
    x_coord = (sm.sum(axis=2) * x_sp).sum(axis=2)
    y_coord = (sm.sum(axis=3) * y_sp).sum(axis=2)
    return jnp.stack([x_coord, y_coord], axis=2)


if __name__ == "__main__":
    # Small shapes: batch=2, in_channels=4, H=W=16 (HW=256 -> 2 tiles of 128),
    # num_joints=8.
    B, C, H, W, J = 2, 4, 16, 16, 8

    key = jax.random.PRNGKey(0)
    kx, kw, kb = jax.random.split(key, 3)
    x = jax.random.normal(kx, (B, C, H, W), dtype=jnp.float32)
    conv_w = 0.1 * jax.random.normal(kw, (J, C), dtype=jnp.float32)
    conv_b = 0.01 * jax.random.normal(kb, (J,), dtype=jnp.float32)

    ref = pose2d_head_ref(x, conv_w, conv_b)

    # f32 path (hw_tile=128 exercises the 2-step online softmax): strict check.
    out_f32 = jax.block_until_ready(
        pose2d_head(x, conv_w, conv_b, hw_tile=128, compute_dtype=jnp.float32))
    assert out_f32.shape == (B, J, 2), out_f32.shape
    assert jnp.allclose(out_f32, ref, atol=1e-5, rtol=1e-5), (
        f"f32 max err {jnp.max(jnp.abs(out_f32 - ref))}")

    # Default bf16-input path (halves HBM traffic): relaxed tolerance.
    out_bf16 = jax.block_until_ready(
        pose2d_head(x, conv_w, conv_b, hw_tile=128))
    assert out_bf16.shape == (B, J, 2), out_bf16.shape
    assert jnp.allclose(out_bf16, ref, atol=5e-3, rtol=0.0), (
        f"bf16 max err {jnp.max(jnp.abs(out_bf16 - ref))}")

    print("KERNEL_OK")
</pallas_src>

<mosaic_0001>
module attributes {stable_mosaic.version = 11 : i64} {
  func.func @_pose2d_kernel(%arg0: i32, %arg1: i32, %arg2: memref<1x4x128xf32, #tpu.memory_space<vmem>>, %arg3: memref<8x4xf32, #tpu.memory_space<vmem>>, %arg4: memref<8x1xf32, #tpu.memory_space<vmem>>, %arg5: memref<128x2xf32, #tpu.memory_space<vmem>>, %arg6: memref<1x8x2xf32, #tpu.memory_space<vmem>>, %arg7: memref<8x1xf32, #tpu.memory_space<vmem>>, %arg8: memref<8x1xf32, #tpu.memory_space<vmem>>, %arg9: memref<8x2xf32, #tpu.memory_space<vmem>>) attributes {dimension_semantics = [#tpu.dimension_semantics<parallel>, #tpu.dimension_semantics<arbitrary>], iteration_bounds = array<i64: 2, 2>, scalar_prefetch = 0 : i64, scratch_operands = 3 : i64, tpu.core_type = #tpu.core_type<tc>, window_params = [{transform_indices = @transform_0, window_bounds = array<i64: 1, 4, 128>}, {pipeline_mode = #tpu.pipeline_mode<synchronous>, transform_indices = @transform_1, window_bounds = array<i64: 8, 4>}, {pipeline_mode = #tpu.pipeline_mode<synchronous>, transform_indices = @transform_2, window_bounds = array<i64: 8, 1>}, {transform_indices = @transform_3, window_bounds = array<i64: 128, 2>}, {transform_indices = @transform_4, window_bounds = array<i64: 1, 8, 2>}]} {
    %c0_i32 = arith.constant 0 : i32
    %0 = arith.cmpi eq, %arg1, %c0_i32 : i32
    %1 = arith.extui %0 : i1 to i32
    %c0_i32_0 = arith.constant 0 : i32
    %2 = arith.cmpi ne, %1, %c0_i32_0 : i32
    scf.if %2 {
      %cst_24 = arith.constant 0xFF800000 : f32
      %58 = vector.broadcast %cst_24 : f32 to vector<8x1xf32>
      %c0_25 = arith.constant 0 : index
      %c0_26 = arith.constant 0 : index
      %59 = vector.load %arg7[%c0_25, %c0_26] : memref<8x1xf32, #tpu.memory_space<vmem>>, vector<8x1xf32>
      tpu.vector_store %arg7[%c0_25, %c0_26], %58 {strides = array<i32>} : memref<8x1xf32, #tpu.memory_space<vmem>>, vector<8x1xf32>,
      %cst_27 = arith.constant 0.000000e+00 : f32
      %60 = vector.broadcast %cst_27 : f32 to vector<8x1xf32>
      %c0_28 = arith.constant 0 : index
      %c0_29 = arith.constant 0 : index
      %61 = vector.load %arg8[%c0_28, %c0_29] : memref<8x1xf32, #tpu.memory_space<vmem>>, vector<8x1xf32>
      tpu.vector_store %arg8[%c0_28, %c0_29], %60 {strides = array<i32>} : memref<8x1xf32, #tpu.memory_space<vmem>>, vector<8x1xf32>,
      %cst_30 = arith.constant 0.000000e+00 : f32
      %62 = vector.broadcast %cst_30 : f32 to vector<8x2xf32>
      %c0_31 = arith.constant 0 : index
      %c0_32 = arith.constant 0 : index
      %63 = vector.load %arg9[%c0_31, %c0_32] : memref<8x2xf32, #tpu.memory_space<vmem>>, vector<8x2xf32>
      tpu.vector_store %arg9[%c0_31, %c0_32], %62 {strides = array<i32>} : memref<8x2xf32, #tpu.memory_space<vmem>>, vector<8x2xf32>,
    } else {
    }
    %c0 = arith.constant 0 : index
    %c0_1 = arith.constant 0 : index
    %3 = vector.load %arg4[%c0, %c0_1] : memref<8x1xf32, #tpu.memory_space<vmem>>, vector<8x1xf32>
    %c0_2 = arith.constant 0 : index
    %c0_3 = arith.constant 0 : index
    %c0_4 = arith.constant 0 : index
    %4 = vector.load %arg2[%c0_2, %c0_3, %c0_4] : memref<1x4x128xf32, #tpu.memory_space<vmem>>, vector<1x4x128xf32>
    %5 = vector.shape_cast %4 : vector<1x4x128xf32> to vector<4x128xf32>
    %c0_5 = arith.constant 0 : index
    %c0_6 = arith.constant 0 : index
    %6 = vector.load %arg3[%c0_5, %c0_6] : memref<8x4xf32, #tpu.memory_space<vmem>>, vector<8x4xf32>
    %7 = vector.extract_strided_slice %6 {offsets = [0, 0], sizes = [8, 1], strides = [1, 1]} : vector<8x4xf32> to vector<8x1xf32>
    %8 = vector.extract_strided_slice %5 {offsets = [0, 0], sizes = [1, 128], strides = [1, 1]} : vector<4x128xf32> to vector<1x128xf32>
    %9 = vector.broadcast %7 : vector<8x1xf32> to vector<8x128xf32>
    %10 = vector.broadcast %8 : vector<1x128xf32> to vector<8x128xf32>
    %11 = arith.mulf %9, %10 : vector<8x128xf32>
    %12 = vector.broadcast %3 : vector<8x1xf32> to vector<8x128xf32>
    %13 = arith.addf %12, %11 : vector<8x128xf32>
    %14 = vector.extract_strided_slice %6 {offsets = [0, 1], sizes = [8, 1], strides = [1, 1]} : vector<8x4xf32> to vector<8x1xf32>
    %15 = vector.extract_strided_slice %5 {offsets = [1, 0], sizes = [1, 128], strides = [1, 1]} : vector<4x128xf32> to vector<1x128xf32>
    %16 = vector.broadcast %14 : vector<8x1xf32> to vector<8x128xf32>
    %17 = vector.broadcast %15 : vector<1x128xf32> to vector<8x128xf32>
    %18 = arith.mulf %16, %17 : vector<8x128xf32>
    %19 = arith.addf %13, %18 : vector<8x128xf32>
    %20 = vector.extract_strided_slice %6 {offsets = [0, 2], sizes = [8, 1], strides = [1, 1]} : vector<8x4xf32> to vector<8x1xf32>
    %21 = vector.extract_strided_slice %5 {offsets = [2, 0], sizes = [1, 128], strides = [1, 1]} : vector<4x128xf32> to vector<1x128xf32>
    %22 = vector.broadcast %20 : vector<8x1xf32> to vector<8x128xf32>
    %23 = vector.broadcast %21 : vector<1x128xf32> to vector<8x128xf32>
    %24 = arith.mulf %22, %23 : vector<8x128xf32>
    %25 = arith.addf %19, %24 : vector<8x128xf32>
    %26 = vector.extract_strided_slice %6 {offsets = [0, 3], sizes = [8, 1], strides = [1, 1]} : vector<8x4xf32> to vector<8x1xf32>
    %27 = vector.extract_strided_slice %5 {offsets = [3, 0], sizes = [1, 128], strides = [1, 1]} : vector<4x128xf32> to vector<1x128xf32>
    %28 = vector.broadcast %26 : vector<8x1xf32> to vector<8x128xf32>
    %29 = vector.broadcast %27 : vector<1x128xf32> to vector<8x128xf32>
    %30 = arith.mulf %28, %29 : vector<8x128xf32>
    %31 = arith.addf %25, %30 : vector<8x128xf32>
    %c0_7 = arith.constant 0 : index
    %c0_8 = arith.constant 0 : index
    %32 = vector.load %arg7[%c0_7, %c0_8] : memref<8x1xf32, #tpu.memory_space<vmem>>, vector<8x1xf32>
    %cst = arith.constant dense<0xFF800000> : vector<8xf32>
    %33 = vector.multi_reduction <maximumf>, %31, %cst [1] : vector<8x128xf32> to vector<8xf32>
    %34 = vector.shape_cast %33 : vector<8xf32> to vector<8x1xf32>
    %35 = arith.maximumf %32, %34 : vector<8x1xf32>
    %36 = arith.subf %32, %35 : vector<8x1xf32>
    %37 = math.exp %36 : vector<8x1xf32>
    %38 = vector.broadcast %35 : vector<8x1xf32> to vector<8x128xf32>
    %39 = arith.subf %31, %38 : vector<8x128xf32>
    %40 = math.exp %39 : vector<8x128xf32>
    %c0_9 = arith.constant 0 : index
    %c0_10 = arith.constant 0 : index
    %41 = vector.load %arg8[%c0_9, %c0_10] : memref<8x1xf32, #tpu.memory_space<vmem>>, vector<8x1xf32>
    %42 = arith.mulf %37, %41 : vector<8x1xf32>
    %cst_11 = arith.constant dense<0.000000e+00> : vector<8xf32>
    %43 = vector.multi_reduction <add>, %40, %cst_11 [1] : vector<8x128xf32> to vector<8xf32>
    %44 = vector.shape_cast %43 : vector<8xf32> to vector<8x1xf32>
    %45 = arith.addf %42, %44 : vector<8x1xf32>
    %c0_12 = arith.constant 0 : index
    %c0_13 = arith.constant 0 : index
    %46 = vector.load %arg8[%c0_12, %c0_13] : memref<8x1xf32, #tpu.memory_space<vmem>>, vector<8x1xf32>
    tpu.vector_store %arg8[%c0_12, %c0_13], %45 {strides = array<i32>} : memref<8x1xf32, #tpu.memory_space<vmem>>, vector<8x1xf32>,
    %c0_14 = arith.constant 0 : index
    %c0_15 = arith.constant 0 : index
    %47 = vector.load %arg9[%c0_14, %c0_15] : memref<8x2xf32, #tpu.memory_space<vmem>>, vector<8x2xf32>
    %48 = vector.broadcast %37 : vector<8x1xf32> to vector<8x2xf32>
    %49 = arith.mulf %48, %47 : vector<8x2xf32>
    %c0_16 = arith.constant 0 : index
    %c0_17 = arith.constant 0 : index
    %50 = vector.load %arg5[%c0_16, %c0_17] : memref<128x2xf32, #tpu.memory_space<vmem>>, vector<128x2xf32>
    %cst_18 = arith.constant dense<0.000000e+00> : vector<8x2xf32>
    %51 = tpu.matmul %40, %50, %cst_18 {dimension_numbers = #tpu.dot_dimension_numbers<[1], [0], [0], [1], [0, 0, 1, 1], [], []>} : vector<8x128xf32>, vector<128x2xf32>, vector<8x2xf32> -> vector<8x2xf32>
    %52 = arith.addf %49, %51 : vector<8x2xf32>
    %c0_19 = arith.constant 0 : index
    %c0_20 = arith.constant 0 : index
    %53 = vector.load %arg9[%c0_19, %c0_20] : memref<8x2xf32, #tpu.memory_space<vmem>>, vector<8x2xf32>
    tpu.vector_store %arg9[%c0_19, %c0_20], %52 {strides = array<i32>} : memref<8x2xf32, #tpu.memory_space<vmem>>, vector<8x2xf32>,
    %c0_21 = arith.constant 0 : index
    %c0_22 = arith.constant 0 : index
    %54 = vector.load %arg7[%c0_21, %c0_22] : memref<8x1xf32, #tpu.memory_space<vmem>>, vector<8x1xf32>
    tpu.vector_store %arg7[%c0_21, %c0_22], %35 {strides = array<i32>} : memref<8x1xf32, #tpu.memory_space<vmem>>, vector<8x1xf32>,
    %c1_i32 = arith.constant 1 : i32
    %55 = arith.cmpi eq, %arg1, %c1_i32 : i32
    %56 = arith.extui %55 : i1 to i32
    %c0_i32_23 = arith.constant 0 : i32
    %57 = arith.cmpi ne, %56, %c0_i32_23 : i32
    scf.if %57 {
      %c0_24 = arith.constant 0 : index
      %c0_25 = arith.constant 0 : index
      %58 = vector.load %arg8[%c0_24, %c0_25] : memref<8x1xf32, #tpu.memory_space<vmem>>, vector<8x1xf32>
      %59 = tpu.reciprocal %58 : vector<8x1xf32> -> vector<8x1xf32>
      %c0_26 = arith.constant 0 : index
      %c0_27 = arith.constant 0 : index
      %60 = vector.load %arg9[%c0_26, %c0_27] : memref<8x2xf32, #tpu.memory_space<vmem>>, vector<8x2xf32>
      %61 = vector.broadcast %59 : vector<8x1xf32> to vector<8x2xf32>
      %62 = arith.mulf %60, %61 : vector<8x2xf32>
      %c0_28 = arith.constant 0 : index
      %c0_29 = arith.constant 0 : index
      %c0_30 = arith.constant 0 : index
      %63 = vector.load %arg6[%c0_28, %c0_29, %c0_30] : memref<1x8x2xf32, #tpu.memory_space<vmem>>, vector<1x8x2xf32>
      %64 = vector.shape_cast %63 : vector<1x8x2xf32> to vector<8x2xf32>
      %65 = vector.shape_cast %62 : vector<8x2xf32> to vector<1x8x2xf32>
      tpu.vector_store %arg6[%c0_28, %c0_29, %c0_30], %65 {strides = array<i32>} : memref<1x8x2xf32, #tpu.memory_space<vmem>>, vector<1x8x2xf32>,
    } else {
    }
    return
  }
  func.func @transform_0(%arg0: i32, %arg1: i32) -> (i32, i32, i32) {
    %c0_i32 = arith.constant 0 : i32
    %c0_i32_0 = arith.constant 0 : i32
    return %arg0, %c0_i32, %arg1 : i32, i32, i32
  }
  func.func @transform_1(%arg0: i32, %arg1: i32) -> (i32, i32) {
    %c0_i32 = arith.constant 0 : i32
    %c0_i32_0 = arith.constant 0 : i32
    %c0_i32_1 = arith.constant 0 : i32
    return %c0_i32, %c0_i32_0 : i32, i32
  }
  func.func @transform_2(%arg0: i32, %arg1: i32) -> (i32, i32) {
    %c0_i32 = arith.constant 0 : i32
    %c0_i32_0 = arith.constant 0 : i32
    %c0_i32_1 = arith.constant 0 : i32
    return %c0_i32, %c0_i32_0 : i32, i32
  }
  func.func @transform_3(%arg0: i32, %arg1: i32) -> (i32, i32) {
    %c0_i32 = arith.constant 0 : i32
    %c0_i32_0 = arith.constant 0 : i32
    return %arg1, %c0_i32 : i32, i32
  }
  func.func @transform_4(%arg0: i32, %arg1: i32) -> (i32, i32, i32) {
    %c0_i32 = arith.constant 0 : i32
    %c0_i32_0 = arith.constant 0 : i32
    %c0_i32_1 = arith.constant 0 : i32
    return %arg0, %c0_i32, %c0_i32_0 : i32, i32, i32
  }
}

</mosaic_0001>

<bundles_post_ra>
// kernel: tpu_custom_call.1
= control target key start
LH: loop header
LB: loop body
LE: loop exit
PB: predicated region body
PF: predicated region fallthrough
CT: control target
= control target key end

     0   :  { %s716_s15 = smov 0   ;;  %s718_s16 = smov 0   ;;  %s813_s0 = inlined_call_operand.vmem [shape: f32[2,4,256], index: 0, kind: input, shape index: {}]   ;;  %s814_s1 = inlined_call_operand.vmem [shape: f32[8,4], index: 1, kind: input, shape index: {}]   ;;  %s815_s2 = inlined_call_operand.vmem [shape: f32[8,1], index: 2, kind: input, shape index: {}]   ;;  %s816_s3 = inlined_call_operand.vmem [shape: f32[256,2], index: 3, kind: input, shape index: {}]   ;;  %s817_s4 = inlined_call_operand.vmem [shape: f32[2,8,2], index: 4, kind: output, shape index: {}]  }
   0x1   :  { %s720_s17 = smov 0   ;;  %s722_s18 = smov 0  }
   0x2   :  { %s724_s19 = smov 0  }
   0x3 LB: > { %s23_s20 = sadd.s32 1, %s672_s17  ;;  %s26_s21 = sadd.s32 1, %s676_s18  ;;  %s680_s19 = sphi %s724_s19, %s14_s19   ;;  %s676_s18 = sphi %s722_s18, %s821_s18   ;;  %s672_s17 = sphi %s720_s17, %s820_s17   ;;  %s668_s16 = sphi %s718_s16, %s819_s16   ;;  %s664_s15 = sphi %s716_s15, %s818_s15  }
   0x4   : > { %p24_p0 = scmp.ge.s32.totalorder %s23_s20, 2  ;;  %p518_p1 = scmp.ge.s32.totalorder %s680_s19, 1 }
   0x5   : > { %p190_p2 = scmp.lt.s32.totalorder %s680_s19, 5 }
   0x6   : > { %s823_s20 = smov (%p24_p0, %s23_s20), 0  ;;  %s825_s21 = smov (!%p24_p0, %s26_s21), %s676_s18 }
   0x7   : > { %p191_p3 = pnand %p518_p1, %p190_p2  ;;  %p28_p4 = scmp.ge.s32.totalorder %s825_s21, 2 }
   0x8   : > { %p223_p5 = scmp.lt.s32.totalorder (!%p191_p3), %s668_s16, 1  ;;  %p225_p6 = scmp.lt.s32.totalorder (!%p191_p3), %s664_s15, 1 }
   0x9   : > { %s827_s21 = smov (%p28_p4, %s825_s21), 0  ;;  %194 = sbr.rel (%p191_p3) target bundleno = 787 (0x313), region = 36 }
   0xa   : > { %s521_s22 = sshll.u32 (!%p191_p3), %s664_s15, 4  ;;  %p524_p8 = scmp.ne.s32.totalorder (!%p191_p3), %s664_s15, 0 }
   0xb   : > { %p232_p7 = scmp.lt.s32.totalorder (!%p191_p3), %s521_s22, 31 }
   0xe   : > { %s829_s16 = smov (!%p223_p5, %s668_s16), 1  ;;  %s831_s22 = smov (!%p232_p7, %s521_s22), 31 }
   0xf   : > { %s226_s23 = scalar_select %p225_p6, %s664_s15, 1 }
  0x10   : > { %s519_s24 = sshll.u32 %s829_s16, 1  ;;  %s523_s26 = sshll.u32 %s829_s16, 3 }
  0x11   : > { %s228_s25 = sadd.s32 %s519_s24, %s226_s23  ;;  %s754_s30 = scalar_lea.vmem %s817_s4, %s523_s26 }
  0x12   : > { %s520_s27 = sshll.u32 %s228_s25, 2  ;;  %s522_s8 = sshll.u32 %s831_s22, 3 }
  0x13   : > { %s759_s7 = scalar_lea.vmem %s813_s0, %s520_s27  ;;  %s764_s11 = scalar_lea.vmem %s816_s3, %s522_s8 }
  0x14   : > { %244 = sbr.rel (%p524_p8) target bundleno = 28 (0x1c), region = 40 }
  0x19   : > { %vm245_vm0 = vcmask 7168   ;;  %vm248_vm1 = vcmask 15360   ;;  %v682_v0 = vmov -inf   ;;  %v683_v1 = vmov 0.0  }
  0x1a   : > { %246 = vst.msk [vmem:[#allocation2] sm:$0xff] %vm245_vm0, %v682_v0  ;;  %247 = vst.msk [vmem:[#allocation3] sm:$0xff] %vm245_vm0, %v683_v1 }
  0x1b   : > { %249 = vst.msk [vmem:[#allocation4] sm:$0xff] %vm248_vm1, %v683_v1 }
  0x1c PF: > { %v252_v2 = vld [vmem:[%s814_s1] sm:$0xff]  ;;  %v684_v3 = vmov 0   ;;  %v685_v4 = vmov 1   ;;  %v686_v6 = vmov 2   ;;  %v687_v7 = vmov 3   ;;  %v343_v32 = vld [vmem:[%s764_s11 + $0x78] sm:$0xff] }
  0x1d   : > { %629 = vset.pattern.permute.xlu0 %v684_v3  ;;  %630 = vset.pattern.permute.xlu1 %v685_v4  ;;  %v250_v5 = vld [vmem:[%s815_s2] sm:$0xff]  ;;  %v258_v8 = vlaneseq  ;;  %v688_v33 = vmov 0.0   ;;  %v342_v34 = vld [vmem:[%s764_s11 + $0x70] sm:$0xff]  ;;  %v341_v35 = vld [vmem:[%s764_s11 + $0x68] sm:$0xff]  ;;  %vm319_vm2 = vcmask 7168   ;;  %vm689_vm3 = vmmov 0  }
  0x1e   : > { %255 = vperm.xlu0 %629, %v252_v2   ;;  %270 = vperm.xlu1 %630, %v252_v2   ;;  %v251_v11 = vld [vmem:[%s759_s7] sm:$0xf]  ;;  %v339_v37 = vld [vmem:[%s764_s11 + $0x58] sm:$0xff]  ;;  %v338_v38 = vld [vmem:[%s764_s11 + $0x50] sm:$0xff]  ;;  %vm415_vm4 = vcmask 15360   ;;  %p525_p9 = scmp.ne.s32.totalorder %s664_s15, 1 }
  0x1f   : > { %v259_v9 = vshrl.u32 %v258_v8, 7  ;;  %545 = vmatprep.subr.mxu0 %v688_v33  ;;  %v340_v36 = vld [vmem:[%s764_s11 + $0x60] sm:$0xff]  ;;  %v337_v39 = vld [vmem:[%s764_s11 + $0x48] sm:$0xff]  ;;  %v335_v44 = vld [vmem:[%s764_s11 + $0x38] sm:$0xff]  ;;  %577 = vmatprep.mubr.msk.f32.mxu0 %vm689_vm3, %v688_v33 }
  0x20   : > { %546 = vmatpush3.msra.mxu0 %v343_v32  ;;  %v336_v41 = vld [vmem:[%s764_s11 + $0x40] sm:$0xff]  ;;  %v334_v46 = vld [vmem:[%s764_s11 + $0x30] sm:$0xff]  ;;  %v333_v47 = vld [vmem:[%s764_s11 + $0x28] sm:$0xff] }
  0x21   : > { %v260_v10 = vsub.s32 0, %v259_v9  ;;  %v275_v12 = vsub.s32 1, %v259_v9  ;;  %v285_v13 = vsub.s32 2, %v259_v9  ;;  %v295_v19 = vsub.s32 3, %v259_v9  ;;  %547 = vmatprep.subr.mxu0 %v688_v33  ;;  %v299_v40 = vld [vmem:[#allocation2] sm:$0xff]  ;;  %v331_v50 = vld [vmem:[%s764_s11 + $0x18] sm:$0xff] }
  0x22   : > { %265 = vperm.xlu0 %629, %v250_v5   ;;  %631 = vset.pattern.permute.xlu1 %v686_v6  ;;  %v332_v49 = vld [vmem:[%s764_s11 + $0x20] sm:$0xff]  ;;  %v330_v51 = vld [vmem:[%s764_s11 + $0x10] sm:$0xff]  ;;  %v329_v52 = vld [vmem:[%s764_s11 + $0x8] sm:$0xff] }
  0x23   : > { %280 = vperm.xlu1 %631, %v252_v2   ;;  %v261_v14 = vrot.slane %v251_v11, %v260_v10  ;;  %v276_v17 = vrot.slane %v251_v11, %v275_v12  ;;  %v286_v18 = vrot.slane %v251_v11, %v285_v13  ;;  %v296_v26 = vrot.slane %v251_v11, %v295_v19  ;;  %v328_v53 = vld [vmem:[%s764_s11] sm:$0xff]  ;;  %v314_v59 = vld [vmem:[#allocation3] sm:$0xff]  ;;  %v321_v63 = vld [vmem:[#allocation4] sm:$0xff] }
  0x24   : > { %548 = vmatpush3.msra.mxu0 %v342_v34 }
  0x25   : > { %549 = vmatprep.subr.mxu0 %v688_v33 }
  0x26   : > { %632 = vset.pattern.permute.xlu0 %v687_v7  ;;  %550 = vmatpush3.msra.mxu0 %v341_v35 }
  0x27   : > { %290 = vperm.xlu0 %632, %v252_v2   ;;  %634 = vset.pattern.permute.xlu1 %v684_v3 }
  0x28   : > { %551 = vmatprep.subr.mxu0 %v688_v33 }
  0x29   : > { %552 = vmatpush3.msra.mxu0 %v340_v36 }
  0x2a   : > { %553 = vmatprep.subr.mxu0 %v688_v33 }
  0x2b   : > { %633 = vset.pattern.permute.xlu0 %v684_v3  ;;  %554 = vmatpush3.msra.mxu0 %v339_v37 }
  0x2c   : > { %555 = vmatprep.subr.mxu0 %v688_v33 }
  0x2d   : > { %556 = vmatpush3.msra.mxu0 %v338_v38 }
  0x2e   : > { %557 = vmatprep.subr.mxu0 %v688_v33 }
  0x2f   : > { %558 = vmatpush3.msra.mxu0 %v337_v39 }
  0x30   : > { %559 = vmatprep.subr.mxu0 %v688_v33 }
  0x31   : > { %560 = vmatpush3.msra.mxu0 %v336_v41 }
  0x32   : > { %561 = vmatprep.subr.mxu0 %v688_v33 }
  0x33   : > { %562 = vmatpush3.msra.mxu0 %v335_v44 }
  0x34   : > { %563 = vmatprep.subr.mxu0 %v688_v33 }
  0x35   : > { %564 = vmatpush3.msra.mxu0 %v334_v46 }
  0x36   : > { %565 = vmatprep.subr.mxu0 %v688_v33 }
  0x37   : > { %566 = vmatpush3.msra.mxu0 %v333_v47 }
  0x38   : > { %567 = vmatprep.subr.mxu0 %v688_v33 }
  0x39   : > { %568 = vmatpush3.msra.mxu0 %v332_v49 }
  0x3a   : > { %569 = vmatprep.subr.mxu0 %v688_v33 }
  0x3b   : > { %570 = vmatpush3.msra.mxu0 %v331_v50 }
  0x3c   : > { %571 = vmatprep.subr.mxu0 %v688_v33 }
  0x3d   : > { %572 = vmatpush3.msra.mxu0 %v330_v51 }
  0x3e   : > { %573 = vmatprep.subr.mxu0 %v688_v33 }
  0x3f   : > { %574 = vmatpush3.msra.mxu0 %v329_v52 }
  0x40   : > { %575 = vmatprep.subr.mxu0 %v688_v33 }
  0x41   : > { %576 = vmatpush3.msra.mxu0 %v328_v53 }
  0x99   : > { %v256_v15 = vpop.permute.xlu0 %255  ;;  %v271_v16 = vpop.permute.xlu1 %270 }
  0x9a   : > { %v262_v20 = vmul.f32 %v261_v14, %v256_v15  ;;  %v277_v22 = vmul.f32 %v276_v17, %v271_v16 }
  0x9d   : > { %v266_v21 = vpop.permute.xlu0 %265 }
  0x9e   : > { %v268_v23 = vadd.f32 %v266_v21, %v262_v20  ;;  %v281_v24 = vpop.permute.xlu1 %280 }
  0x9f   : > { %v287_v25 = vmul.f32 %v286_v18, %v281_v24 }
  0xa0   : > { %v278_v27 = vadd.f32 %v277_v22, %v268_v23 }
  0xa2   : > { %v288_v28 = vadd.f32 %v287_v25, %v278_v27  ;;  %v291_v29 = vpop.permute.xlu0 %290 }
  0xa3   : > { %v297_v30 = vmul.f32 %v296_v26, %v291_v29 }
  0xa5   : > { %v774_v31 = vadd.f32 %v297_v30, %v288_v28 }
  0xa7   : > { %300 = vmax.xlane.f32.xlu1 %v774_v31 }
 0x130   : > { %v301_v42 = vpop.xlane.xlu1 %300 }
 0x131   : > { %v302_v43 = vmax.f32 %v299_v40, %v301_v42 }
 0x133   : > { %v303_v45 = vsub.f32 %v299_v40, %v302_v43  ;;  %417 = vst.msk [vmem:[#allocation2] sm:$0xff] %vm319_vm2, %v302_v43  ;;  %308 = vperm.xlu0 %633, %v302_v43  }
 0x135   : > { %v304_v48 = vmul.f32 1.442695, %v303_v45 }
 0x137   : > { %635 = vpow2.f32 %v304_v48 }
 0x144   : > { %v636_v54 = vpop.eup %635 }
 0x145   : > { %324 = vperm.xlu1 %634, %v636_v54   ;;  %v315_v60 = vmul.f32 %v636_v54, %v314_v59 }
 0x1ae   : > { %v309_v55 = vpop.permute.xlu0 %308 }
 0x1af   : > { %v311_v56 = vsub.f32 %v774_v31, %v309_v55 }
 0x1b1   : > { %v312_v57 = vmul.f32 1.442695, %v311_v56 }
 0x1b3   : > { %637 = vpow2.f32 %v312_v57 }
 0x1c0   : > { %v638_v58 = vpop.eup %637  ;;  %v325_v0 = vpop.permute.xlu1 %324 }
 0x1c1   : > { %316 = vadd.xlane.f32.xlu0 %v638_v58  ;;  %578 = vmatmul.mubr.f32.vlgmr.msra.gmra.mxu0 %v638_v58  ;;  %v327_v1 = vmul.f32 %v325_v0, %v321_v63 }
 0x24a   : > { %v317_v61 = vpop.xlane.xlu0 %316 }
 0x24b   : > { %v318_v62 = vadd.f32 %v317_v61, %v315_v60 }
 0x24d   : > { %320 = vst.msk [vmem:[#allocation3] sm:$0xff] %vm319_vm2, %v318_v62 }
 0x280   : > { %421 = sbr.rel (%p525_p9) target bundleno = 787 (0x313), region = 44 }
 0x281   : > { %v410_v2 = vpop.f32.mrf.mxu0 }
 0x282   : > { %v414_v3 = vadd.f32 %v410_v2, %v327_v1 }
 0x283   : > { %v579_v4 = vpop.f32.mrf.mxu0 }
 0x284   : > { %416 = vst.msk [vmem:[#allocation4] sm:$0xff] %vm415_vm4, %v414_v3 }
 0x285   : > { %v422_v5 = vld [vmem:[#allocation3] sm:$0xff]  ;;  %v690_v6 = vmov 0  }
 0x286   : > { %639 = vset.pattern.permute.xlu0 %v690_v6  ;;  %640 = vrcp.f32 %v422_v5 }
 0x28b   : > { %v424_v8 = vld [vmem:[#allocation4] sm:$0xff] }
 0x293   : > { %v641_v7 = vpop.eup %640 }
 0x294   : > { %427 = vperm.xlu0 %639, %v641_v7  }
 0x30f   : > { %v428_v9 = vpop.permute.xlu0 %427 }
 0x310   : > { %v430_v10 = vmul.f32 %v428_v9, %v424_v8 }
 0x312   : > { %431 = vst.msk [vmem:[%s754_s30] sm:$0xff] %vm415_vm4, %v430_v10 }
 0x313 PF: > { %s14_s19 = sadd.s32 1, %s680_s19   ;;  %s818_s15 = smov %s672_s17 }
 0x314   : > { %p11_p10 = scmp.ge.s32.totalorder %s14_s19, 6   ;;  %s819_s16 = smov %s676_s18 }
 0x315   : > { %s820_s17 = smov %s823_s20  ;;  %s821_s18 = smov %s827_s21 }
 0x316   :  { %13 = sbr.rel (!%p11_p10) target bundleno = 3 (0x3), region = 77 }

</bundles_post_ra>
